<compile_context>
chip_gen: v7x
topology: tpu7x:2x2x1
jax: 0.10.0
libtpu: 0.0.40
codegen_flags: <defaults>
</compile_context>

<pallas_src>
import jax
import jax.numpy as jnp
from jax.experimental import pallas as pl
from jax.experimental.pallas import tpu as pltpu


def _scale_prelu_kernel(params_ref, x_ref, o_ref):
    # params_ref: SMEM (4,) float32 -> [b1, b2, k1, k2]
    b1 = params_ref[0]
    b2 = params_ref[1]
    k1 = params_ref[2]
    k2 = params_ref[3]

    xi = x_ref[...] + b1
    # Single select instead of mask*k1 + (1-mask)*k2 arithmetic.
    out = xi * jnp.where(xi > 0, k1, k2) + b2
    o_ref[...] = out.astype(o_ref.dtype)


def _default_block_bytes():
    """Generation-aware block size; conservative fallback if query fails."""
    try:
        kind = jax.devices()[0].device_kind.lower()
    except Exception:
        return 2 * 1024 * 1024
    if "v7" in kind:
        return 8 * 1024 * 1024   # ~3.2 TB/s/TC: amortize per-step overhead
    if "v6" in kind:
        return 4 * 1024 * 1024   # ~1.3-1.4 TB/s
    return 2 * 1024 * 1024       # v5e / unknown: already at HBM roofline


def _round_up(a, m):
    return -(-a // m) * m


def scale_prelu(x, b1, b2, k1, k2, *, target_block_bytes=None):
    """Elementwise Scale_PRelu. x: any shape (e.g. NCHW)."""
    orig_shape = x.shape
    dtype = x.dtype
    n = x.size
    itemsize = jnp.dtype(dtype).itemsize

    LANE = 128                        # lane width: unmasked vst, contiguous DMA
    sub = max(8, 32 // itemsize)      # dtype-aware sublane grain (f32:8 bf16:16 i8:32)

    if target_block_bytes is None:
        target_block_bytes = _default_block_bytes()

    flat = x.reshape(-1)
    n_tail = n % LANE
    n_main = n - n_tail
    rows = n_main // LANE

    outs = []
    if rows > 0:
        # Row tile sized for ~target_block_bytes per block, multiple of `sub`.
        tr = max(sub, (target_block_bytes // (LANE * itemsize)) // sub * sub)
        if rows <= tr:
            if rows >= 2 * sub:
                # Keep >= 2 grid steps so v7x can shard across both TensorCores.
                tr = _round_up(-(-rows // 2), sub)
            else:
                # Block equals full array rows (allowed even if not a multiple of 8).
                tr = rows
        grid = (pl.cdiv(rows, tr),)   # non-divisible grid: last block is masked

        block_bytes = tr * LANE * itemsize
        # Double-buffered input + output blocks plus headroom.
        vmem_limit = int(max(16 * 1024 * 1024, 6 * block_bytes))

        x2d = flat[:n_main].reshape(rows, LANE)
        params = jnp.array([b1, b2, k1, k2], dtype=jnp.float32)

        out2d = pl.pallas_call(
            _scale_prelu_kernel,
            out_shape=jax.ShapeDtypeStruct((rows, LANE), dtype),
            grid_spec=pltpu.PrefetchScalarGridSpec(
                num_scalar_prefetch=0,
                grid=grid,
                in_specs=[
                    pl.BlockSpec(memory_space=pltpu.SMEM),       # params (4,)
                    pl.BlockSpec((tr, LANE), lambda i: (i, 0)),  # x block
                ],
                out_specs=pl.BlockSpec((tr, LANE), lambda i: (i, 0)),
            ),
            compiler_params=pltpu.CompilerParams(
                dimension_semantics=("parallel",),
                vmem_limit_bytes=vmem_limit,
            ),
        )(params, x2d)
        outs.append(out2d.reshape(-1))

    if n_tail > 0:
        # Ragged tail (< 128 elements): trivially small, plain jnp. Avoids a
        # whole-array pad + slice HBM round trip on this memory-bound op.
        tail = flat[n_main:]
        xi = tail + b1
        outs.append((xi * jnp.where(xi > 0, k1, k2) + b2).astype(dtype))

    out_flat = outs[0] if len(outs) == 1 else jnp.concatenate(outs)
    return out_flat.reshape(orig_shape)


def scale_prelu_ref(x, b1, b2, k1, k2):
    xi = x + b1
    mask = (xi > 0).astype(jnp.float32)
    return xi * mask * k1 + xi * (1.0 - mask) * k2 + b2


if __name__ == "__main__":
    key = jax.random.PRNGKey(0)

    # Deterministic parameter init, matching the module's __init__.
    b1 = jnp.float32(0.0)
    b2 = jnp.float32(0.0)
    k1 = jnp.float32(1.0)
    k2 = jnp.float32(0.1)

    # Primary check: NCHW, 128-aligned size -> zero-copy kernel path.
    x = jax.random.normal(key, (2, 4, 16, 16), dtype=jnp.float32)
    out = jax.block_until_ready(scale_prelu(x, b1, b2, k1, k2))
    ref = scale_prelu_ref(x, b1, b2, k1, k2)
    assert out.shape == x.shape and out.dtype == x.dtype
    assert jnp.allclose(out, ref, atol=1e-6, rtol=1e-6)

    # Secondary check: misaligned size -> kernel on aligned prefix + jnp tail.
    x2 = jax.random.normal(jax.random.PRNGKey(1), (2, 3, 10, 11), dtype=jnp.float32)
    out2 = jax.block_until_ready(scale_prelu(x2, b1, b2, k1, k2))
    ref2 = scale_prelu_ref(x2, b1, b2, k1, k2)
    assert out2.shape == x2.shape and out2.dtype == x2.dtype
    assert jnp.allclose(out2, ref2, atol=1e-6, rtol=1e-6)

    print("KERNEL_OK")
</pallas_src>

<mosaic_0001>
module attributes {stable_mosaic.version = 11 : i64} {
  func.func @_scale_prelu_kernel(%arg0: i32, %arg1: memref<4xf32, #tpu.memory_space<smem>>, %arg2: memref<8x128xf32, #tpu.memory_space<vmem>>, %arg3: memref<8x128xf32, #tpu.memory_space<vmem>>) attributes {dimension_semantics = [#tpu.dimension_semantics<parallel>], iteration_bounds = array<i64: 2>, scalar_prefetch = 0 : i64, scratch_operands = 0 : i64, tpu.core_type = #tpu.core_type<tc>, window_params = [{transform_indices = @transform_0, window_bounds = array<i64: 4>}, {transform_indices = @transform_1, window_bounds = array<i64: 8, 128>}, {transform_indices = @transform_2, window_bounds = array<i64: 8, 128>}]} {
    %c0 = arith.constant 0 : index
    %0 = memref.load %arg1[%c0] : memref<4xf32, #tpu.memory_space<smem>>
    %c1 = arith.constant 1 : index
    %1 = memref.load %arg1[%c1] : memref<4xf32, #tpu.memory_space<smem>>
    %c2 = arith.constant 2 : index
    %2 = memref.load %arg1[%c2] : memref<4xf32, #tpu.memory_space<smem>>
    %c3 = arith.constant 3 : index
    %3 = memref.load %arg1[%c3] : memref<4xf32, #tpu.memory_space<smem>>
    %c0_0 = arith.constant 0 : index
    %c0_1 = arith.constant 0 : index
    %4 = vector.load %arg2[%c0_0, %c0_1] : memref<8x128xf32, #tpu.memory_space<vmem>>, vector<8x128xf32>
    %5 = vector.broadcast %0 : f32 to vector<8x128xf32>
    %6 = arith.addf %4, %5 : vector<8x128xf32>
    %cst = arith.constant 0.000000e+00 : f32
    %7 = vector.broadcast %cst : f32 to vector<8x128xf32>
    %8 = arith.cmpf ogt, %6, %7 : vector<8x128xf32>
    %9 = vector.broadcast %2 : f32 to vector<8x128xf32>
    %10 = vector.broadcast %3 : f32 to vector<8x128xf32>
    %11 = arith.select %8, %9, %10 : vector<8x128xi1>, vector<8x128xf32>
    %12 = arith.mulf %6, %11 : vector<8x128xf32>
    %13 = vector.broadcast %1 : f32 to vector<8x128xf32>
    %14 = arith.addf %12, %13 : vector<8x128xf32>
    %c0_2 = arith.constant 0 : index
    %c0_3 = arith.constant 0 : index
    %15 = vector.load %arg3[%c0_2, %c0_3] : memref<8x128xf32, #tpu.memory_space<vmem>>, vector<8x128xf32>
    tpu.vector_store %arg3[%c0_2, %c0_3], %14 {strides = array<i32>} : memref<8x128xf32, #tpu.memory_space<vmem>>, vector<8x128xf32>,
    return
  }
  func.func @transform_0(%arg0: i32) -> i32 {
    %c0_i32 = arith.constant 0 : i32
    %c0_i32_0 = arith.constant 0 : i32
    return %c0_i32 : i32
  }
  func.func @transform_1(%arg0: i32) -> (i32, i32) {
    %c0_i32 = arith.constant 0 : i32
    %c0_i32_0 = arith.constant 0 : i32
    return %arg0, %c0_i32 : i32, i32
  }
  func.func @transform_2(%arg0: i32) -> (i32, i32) {
    %c0_i32 = arith.constant 0 : i32
    %c0_i32_0 = arith.constant 0 : i32
    return %arg0, %c0_i32 : i32, i32
  }
}

</mosaic_0001>

<bundles_post_ra>
// kernel: tpu_custom_call.1
= control target key start
LH: loop header
LB: loop body
LE: loop exit
PB: predicated region body
PF: predicated region fallthrough
CT: control target
= control target key end

     0   :  { %7 = vsyncpa [#allocation5], 0  ;;  %s694_s0 = inlined_call_operand.hbm [shape: f32[4], index: 0, kind: input, shape index: {}]   ;;  %s695_s1 = inlined_call_operand.hbm [shape: f32[16,128], index: 1, kind: input, shape index: {}]   ;;  %s696_s2 = inlined_call_operand.hbm [shape: f32[16,128], index: 2, kind: output, shape index: {}]  }
   0x1   :  { %8 = vsyncpa [#allocation3], 0 }
   0x2   :  { %10 = vsyncpa [#allocation3 + $0x1], 0 }
   0x3   :  { %11 = vsyncpa [#allocation4], 0 }
   0x4   :  { %13 = vsyncpa [#allocation4 + $0x1], 0  ;;  %s489_s9 = smov 0   ;;  %s491_s10 = smov 0  }
   0x5   :  { %s493_s11 = smov 0   ;;  %s495_s12 = smov 0  }
   0x6 LB: > { %s510_s13 = sadd.s32 4294967295, %s469_s12   ;;  %s282_s14 = sadd.s32 4294967294, %s469_s12   ;;  %s469_s12 = sphi %s495_s12, %s717_s12   ;;  %s465_s11 = sphi %s493_s11, %s716_s11   ;;  %s461_s10 = sphi %s491_s10, %s715_s10   ;;  %s457_s9 = sphi %s489_s9, %s714_s9  }
   0x7   : > { %p60_p0 = scmp.ne.s32.totalorder %s461_s10, %s457_s9  ;;  %p697_p1 = scmp.eq.s32.totalorder %s510_s13, 0 }
   0x8   : > { %p90_p3 = scmp.eq.s32.totalorder %s282_s14, 1  ;;  %p283_p5 = scmp.ge.s32.totalorder %s469_s12, 1 }
   0x9   : > { %p519_p4 = por %p697_p1, %p60_p0  ;;  %p97_p7 = scmp.lt.s32.totalorder %s469_s12, 3 }
   0xa   : > { %p524_p6 = por %p90_p3, %p60_p0  ;;  %s535_s18 = sadd.s32 1, %s469_s12  }
   0xb   : > { %s700_s15 = scalar_select %p519_p4, 1, 0 }
   0xc   : > { %s701_s16 = scalar_select %p524_p6, 1, 0 }
   0xd   : > { %p529_p8 = pnand %p283_p5, %p97_p7  ;;  %s44_s19 = ssub.s32 %s469_s12, %s535_s18 }
   0xe   : > { %s47_s20 = sadd.s32 1, %s465_s11  ;;  %p548_p12 = scmp.eq.s32.totalorder %s44_s19, 0 }
   0xf   : > { %p307_p10 = pneg %p529_p8  ;;  %p54_p13 = scmp.ne.s32.totalorder %s465_s11, %s461_s10 }
  0x10   : > { %p55_p0 = scmp.eq.s32.totalorder %s469_s12, 0  ;;  %p320_p3 = scmp.lt.s32.totalorder %s469_s12, 2 }
  0x11   : > { %p544_p11 = pnand %p307_p10, %p697_p1  ;;  %s356_s25 = scalar_lea.hbm %s694_s0, 16 }
  0x12   : > { %p357_p5 = scmp.ne.s32.totalorder %s694_s0, %s356_s25  ;;  %p363_p1 = scmp.lt.u32.totalorder %s356_s25, %s694_s0 }
  0x13   : > { %p358_p7 = pneg %p544_p11 }
  0x15   : > { %p359_p10 = pnand %p358_p7, %p357_p5 }
  0x17   : > { %p360_p9 = pneg %p359_p10 }
  0x19   : > { %p365_p2 = pnand %p363_p1, %p360_p9 }
  0x1b   : > { %368 = shalt.err (!%p365_p2)
}
  0x1c   : > { %s471_s30 = smov [#allocation2]   ;;  %p56_p1 = por %p55_p0, %p54_p13 }
  0x1d   : > { %310 = dma.hbm_to_smem (!%p544_p11), %s694_s0, 16, %s471_s30, [#allocation5]  }
  0x1e   : > { %s575_s5 = scalar_select %p548_p12, %s465_s11, %s47_s20  }
  0x1f   : > { %p705_p2 = scmp.eq.s32.totalorder %s510_s13, 1  ;;  %s119_s7 = sand.u32 1, %s465_s11  }
  0x20   : > { %s287_s8 = sshll.u32 %s469_s12, 7  ;;  %s286_s14 = sshll.u32 %s119_s7, 3 }
  0x21   : > { %p587_p9 = por %p705_p2, %p54_p13  ;;  %s596_s23 = scalar_lea.hbm %s695_s1, %s287_s8 }
  0x22   : > { %s123_s20 = scalar_lea.vmem [#allocation6], %s286_s14  ;;  %p600_p11 = pnand %p320_p3, %p56_p1 }
  0x23   : > { %s706_s6 = scalar_select %p587_p9, 1, 0 }
  0x24   : > { %s130_s22 = sshll.u32 %s123_s20, 4  ;;  %s120_s25 = scalar_lea.sflag [#allocation3], %s119_s7  ;;  %s604_s22 = int_to_ptr.vmem [resolvable:$true] %s130_s22 }
  0x25   : > { %s369_s26 = scalar_lea.hbm %s596_s23, 128  ;;  %p371_p13 = pneg %p600_p11 }
  0x26   : > { %p370_p12 = scmp.ne.s32.totalorder %s596_s23, %s369_s26  ;;  %s374_s29 = scalar_lea.hbm %s695_s1, 256 }
  0x27   : > { %p375_p3 = scmp.lt.u32.totalorder %s596_s23, %s695_s1  ;;  %p376_p7 = scmp.lt.u32.totalorder %s374_s29, %s369_s26 }
  0x28   : > { %p372_p0 = pnand %p371_p13, %p370_p12  ;;  %p378_p1 = scmp.lt.u32.totalorder %s369_s26, %s596_s23 }
  0x29   : > { %p377_p10 = por %p376_p7, %p375_p3 }
  0x2a   : > { %p373_p5 = pneg %p372_p0 }
  0x2b   : > { %p379_p2 = por %p378_p1, %p377_p10 }
  0x2d   : > { %p380_p6 = pnand %p379_p2, %p373_p5 }
  0x2f   : > { %383 = shalt.err (!%p380_p6)
}
  0x30   : > { %s384_s4 = scalar_lea.vmem %s604_s22, 128  ;;  %s472_s7 = smov [#allocation6]  }
  0x31   : > { %p385_p12 = scmp.ne.s32.totalorder %s604_s22, %s384_s4  ;;  %s389_s8 = sshll.u32 %s472_s7, 4  ;;  %s390_s8 = int_to_ptr.vmem [resolvable:$false] %s389_s8 }
  0x32   : > { %s391_s14 = scalar_lea.vmem %s390_s8, 256  ;;  %p392_p4 = scmp.lt.s32.totalorder %s604_s22, %s390_s8 }
  0x33   : > { %p387_p0 = pnand %p385_p12, %p371_p13  ;;  %p393_p3 = scmp.lt.s32.totalorder %s391_s14, %s384_s4 }
  0x35   : > { %p388_p9 = pneg %p387_p0  ;;  %p394_p7 = por %p393_p3, %p392_p4 }
  0x37   : > { %p395_p10 = pnand %p394_p7, %p388_p9 }
  0x39   : > { %398 = shalt.err (!%p395_p10)
}
  0x3a   : > { %314 = dma.hbm_to_vmem [thread:$0]  (!%p600_p11), %s596_s23, 128, %s604_s22, %s120_s25  }
  0x3b   : > { %139 = sbr.rel (%p529_p8) target bundleno = 102 (0x66), region = 28  ;;  %p708_p6 = scmp.eq.s32.totalorder (!%p529_p8), %s510_s13, 0 }
  0x42   : > { %444 = dma.done.wait (%p708_p6), [#allocation5], 16   ;;  %p709_p13 = pmov %p708_p6 }
  0x43   : > { %s638_s19 = sand.u32 1, %s461_s10   ;;  %p710_p4 = scmp.ne.s32.totalorder %s700_s15, 0 }
  0x44   : > { %446 = vsyncadd (%p709_p13), [#allocation5], 4294967280  ;;  %s290_s21 = sshll.u32 %s638_s19, 3  ;;  %s146_s20 = scalar_lea.sflag [#allocation3], %s638_s19 }
  0x45   : > { %s149_s24 = scalar_lea.vmem [#allocation6], %s290_s21 }
  0x46   : > { %448 = dma.done.wait (%p710_p4), %s146_s20, 128  }
  0x47   : > { %450 = vsyncadd (%p710_p4), %s146_s20, 4294967168 }
  0x48   : > { %154 = sfence }
  0x49   : > { %s171_s17 = sld [smem:[#allocation2]]  ;;  %s293_s23 = sld [smem:[#allocation2 + $0x2]]  ;;  %v175_v0 = vld [vmem:[%s149_s24] sm:$0xff] }
  0x4a   : > { %s292_s22 = sld [smem:[#allocation2 + $0x1]]  ;;  %s294_s25 = sld [smem:[#allocation2 + $0x3]] }
  0x4b   : > { %s170_s26 = scalar_lea.vmem [#allocation7], %s290_s21  ;;  %s296_s15 = sshll.u32 %s510_s13, 7 }
  0x4c   : > { %s200_s27 = sshll.u32 %s170_s26, 4  ;;  %s652_s30 = scalar_lea.hbm %s696_s2, %s296_s15  ;;  %s647_s27 = int_to_ptr.vmem [resolvable:$true] %s200_s27 }
  0x4d   : > { %s187_s3 = scalar_lea.sflag [#allocation4], %s638_s19  ;;  %s399_s4 = scalar_lea.vmem %s647_s27, 128 }
  0x4e   : > { %p400_p8 = scmp.ne.s32.totalorder %s647_s27, %s399_s4  ;;  %p711_p9 = scmp.ne.s32.totalorder %s706_s6, 0 }
  0x4f   : > { %v176_v1 = vstv %s171_s17  ;;  %v179_v3 = vstv %s293_s23  ;;  %s473_s13 = smov [#allocation7]  }
  0x50   : > { %v177_v2 = vadd.f32 %v176_v1, %v175_v0  ;;  %v180_v4 = vstv %s294_s25  ;;  %v183_v6 = vstv %s292_s22  ;;  %p401_p11 = pnand %p400_p8, %p711_p9  ;;  %s403_s7 = sshll.u32 %s473_s13, 4  ;;  %s404_s7 = int_to_ptr.vmem [resolvable:$false] %s403_s7 }
  0x51   : > { %s405_s8 = scalar_lea.vmem %s404_s7, 256  ;;  %p406_p1 = scmp.lt.s32.totalorder %s647_s27, %s404_s7 }
  0x52   : > { %vm178_vm0 = vcmp.gt.f32.partialorder %v177_v2, 0.0  ;;  %p402_p5 = pneg %p401_p11  ;;  %p407_p2 = scmp.lt.s32.totalorder %s405_s8, %s399_s4 }
  0x53   : > { %v181_v5 = vsel %vm178_vm0, %v179_v3, %v180_v4 }
  0x54   : > { %v182_v7 = vmul.f32 %v181_v5, %v177_v2  ;;  %p408_p12 = por %p407_p2, %p406_p1 }
  0x56   : > { %v184_v8 = vadd.f32 %v183_v6, %v182_v7  ;;  %p409_p0 = pnand %p408_p12, %p402_p5 }
  0x58   : > { %185 = vst [vmem:[%s170_s26] sm:$0xff] %v184_v8 }
  0x59   : > { %412 = shalt.err (!%p409_p0)
}
  0x5a   : > { %s413_s14 = scalar_lea.hbm %s652_s30, 128  ;;  %s417_s20 = scalar_lea.hbm %s696_s2, 256 }
  0x5b   : > { %p414_p3 = scmp.ne.s32.totalorder %s652_s30, %s413_s14  ;;  %p418_p6 = scmp.lt.u32.totalorder %s652_s30, %s696_s2 }
  0x5c   : > { %p419_p13 = scmp.lt.u32.totalorder %s417_s20, %s413_s14  ;;  %p421_p8 = scmp.lt.u32.totalorder %s413_s14, %s652_s30 }
  0x5d   : > { %p415_p7 = pnand %p414_p3, %p711_p9 }
  0x5e   : > { %p420_p4 = por %p419_p13, %p418_p6 }
  0x5f   : > { %p416_p10 = pneg %p415_p7 }
  0x60   : > { %p422_p11 = por %p421_p8, %p420_p4 }
  0x62   : > { %p423_p5 = pnand %p422_p11, %p416_p10 }
  0x64   : > { %426 = shalt.err (!%p423_p5)
}
  0x65   : > { %305 = dma.vmem_to_hbm [thread:$0]  (%p711_p9), %s647_s27, 128, %s652_s30, %s187_s3  }
  0x66 PF: > { %s212_s23 = sand.u32 1, %s457_s9   ;;  %p712_p1 = scmp.ne.s32.totalorder %s701_s16, 0 }
  0x67   : > { %p713_p2 = scmp.ge.s32.totalorder %s469_s12, 2  ;;  %s213_s22 = scalar_lea.sflag [#allocation4], %s212_s23 }
  0x69   : > { %p316_p12 = pnand %p713_p2, %p712_p1 }
  0x6b   : > { %452 = dma.done.wait (!%p316_p12), %s213_s22, 128  }
  0x6c   : > { %454 = vsyncadd (!%p316_p12), %s213_s22, 4294967168  ;;  %p16_p0 = scmp.ge.s32.totalorder %s535_s18, 4   ;;  %s714_s9 = smov %s461_s10 }
  0x6d   : > { %s715_s10 = smov %s465_s11  ;;  %s716_s11 = smov %s575_s5 }
  0x6e   : > { %s717_s12 = smov %s535_s18  ;;  %18 = sbr.rel (!%p16_p0) target bundleno = 6 (0x6), region = 78 }
  0x75   :  { %218 = vsyncpa [#allocation3], 1 }
  0x76   :  { %220 = vsyncpa [#allocation3 + $0x1], 1 }
  0x77   :  { %221 = vsyncpa [#allocation4], 1 }
  0x78   :  { %223 = vsyncpa [#allocation4 + $0x1], 1 }
  0x79   :  { %224 = vsyncpa [#allocation5], 1 }
  0x7a   :  { %226 = vsyncpa [#allocation5 + $0x1], 1 }

</bundles_post_ra>
